<compile_context>
chip_gen: v7x
topology: tpu7x:2x2x1
jax: 0.10.0
libtpu: 0.0.40
codegen_flags: <defaults>
</compile_context>

<pallas_src>
import jax
import jax.numpy as jnp
from jax import lax
from jax.experimental import pallas as pl
from jax.experimental.pallas import tpu as pltpu

LN_EPS = 1e-5


def _patch_merge_kernel(xe_ref, xo_ref, we_ref, wo_ref, cb_ref, o_ref):
    # xe_ref: (th, Wh, 2C)   h-even rows, channels [x0 | x2]
    # xo_ref: (th, Wh, 2C)   h-odd  rows, channels [x1 | x3]
    # we_ref: (2C, 2Cp)      gamma-folded, permuted weight rows for the even half
    # wo_ref: (2C, 2Cp)      gamma-folded, permuted weight rows for the odd half
    # cb_ref: (2, 2Cp) f32   row 0 = ones(4C) @ W_eff, row 1 = beta @ W
    # o_ref : (th, Wh, 2Cp)
    th, wh, two_c = xe_ref.shape
    rows = th * wh

    xe = xe_ref[...].reshape(rows, two_c)
    xo = xo_ref[...].reshape(rows, two_c)

    # LayerNorm statistics over all 4C channels, accumulated in f32.
    xe32 = xe.astype(jnp.float32)
    xo32 = xo.astype(jnp.float32)
    s = (jnp.sum(xe32, axis=-1, keepdims=True)
         + jnp.sum(xo32, axis=-1, keepdims=True))
    ss = (jnp.sum(xe32 * xe32, axis=-1, keepdims=True)
          + jnp.sum(xo32 * xo32, axis=-1, keepdims=True))
    inv_n = 1.0 / (2.0 * two_c)                       # 1 / 4C
    mean = s * inv_n
    var = jnp.maximum(ss * inv_n - mean * mean, 0.0)
    rstd = lax.rsqrt(var + LN_EPS)

    # Split-K matmul on raw activations (MXU in operand dtype, f32 accumulate).
    acc = jnp.dot(xe.astype(we_ref.dtype), we_ref[...],
                  preferred_element_type=jnp.float32)
    acc = acc + jnp.dot(xo.astype(wo_ref.dtype), wo_ref[...],
                        preferred_element_type=jnp.float32)

    colsum_w = cb_ref[0:1, :]                         # (1, 2Cp)
    bias = cb_ref[1:2, :]                             # (1, 2Cp)
    out = rstd * (acc - mean * colsum_w) + bias       # commuted LayerNorm
    o_ref[...] = out.reshape(th, wh, -1).astype(o_ref.dtype)


def _vmem_capacity_bytes(default=128 * 1024 * 1024):
    try:
        cap = int(pltpu.get_tpu_info().vmem_capacity_bytes)
        if cap > 0:
            return cap
    except Exception:
        pass
    return default


def _pick_row_tile(HB, Wh, two_c, two_cp, x_bytes, w_bytes,
                   target_rows, vmem_budget_bytes, min_steps):
    """Pick th (half-grid rows per grid step).  rows/step = th*Wh merged tokens.
    The grid uses cdiv, so th need not divide HB."""
    def vmem_est(th):
        rows = th * Wh
        return (2 * 2 * rows * two_c * x_bytes      # xe + xo blocks, double-buffered
                + 2 * rows * two_cp * x_bytes       # output block, double-buffered
                + 2 * two_c * two_cp * w_bytes      # We + Wo, single-buffered
                + 2 * two_cp * 4                    # colsum / bias row
                + rows * two_cp * 4                 # f32 accumulator
                + 2 * rows * two_c * 4)             # f32 stats temporaries

    th = max(1, min(HB, target_rows // max(Wh, 1)))
    # Keep >= min_steps grid steps (when HB allows): enables 2-TC sharding of
    # the "parallel" axis on v7x and keeps the pipeline multi-stage.
    if min_steps > 0 and HB >= min_steps:
        th = min(th, max(1, HB // min_steps))
    while th > 1 and vmem_est(th) > vmem_budget_bytes:
        th = max(1, th // 2)
    return th


def patch_merge(x, resolution, gamma, beta, w_red, *,
                target_rows=1024,
                min_steps=4,
                row_block=None,
                pad_output_lanes=False,
                mxu_bf16=False,
                vmem_limit_bytes=None):
    """x: (B, H*W, C) -> (B, H*W/4, 2C).  Matches torch PatchMerge.forward.

    w_red is the (4C, 2C) transpose of nn.Linear(4C, 2C, bias=False).weight.
    """
    H, W = resolution
    B, L, C = x.shape
    assert L == H * W
    assert H % 2 == 0 and W % 2 == 0
    c4, two_c = 4 * C, 2 * C
    assert gamma.shape == (c4,) and beta.shape == (c4,)
    assert w_red.shape == (c4, two_c)

    Hh, Wh = H // 2, W // 2
    HB = B * Hh

    # -- free view (no HBM traffic): (B, H*W, C) -> (B*H/2, 2, W/2, 2C) -------
    x_r = x.reshape(HB, 2, Wh, two_c)

    # -- fold gather permutation + LN affine into the weight (offline, exact) --
    # Kernel channel order is [x0, x2, x1, x3]; torch cat order is [x0,x1,x2,x3].
    perm = jnp.concatenate([
        jnp.arange(0 * C, 1 * C), jnp.arange(2 * C, 3 * C),
        jnp.arange(1 * C, 2 * C), jnp.arange(3 * C, 4 * C)])
    gamma32 = gamma.astype(jnp.float32)
    w32 = w_red.astype(jnp.float32)
    w_eff = gamma32[perm][:, None] * w32[perm, :]                    # (4C, 2C)
    bias = jnp.dot(beta.astype(jnp.float32), w32,
                   precision=lax.Precision.HIGHEST)                  # (2C,)

    # -- optional lane padding of the output --------------------------------
    two_cp = two_c
    if pad_output_lanes and two_c % 128 != 0:
        two_cp = ((two_c + 127) // 128) * 128
        pad = two_cp - two_c
        w_eff = jnp.pad(w_eff, ((0, 0), (0, pad)))
        bias = jnp.pad(bias, (0, pad))

    # -- MXU operand dtype ----------------------------------------------------
    if mxu_bf16 and x.dtype == jnp.float32:
        compute_dtype = jnp.bfloat16          # opt-in fast path for f32 inputs
    else:
        compute_dtype = x.dtype               # bf16 inputs -> bf16 MXU operands

    w_cd = w_eff.astype(compute_dtype)
    # colsum from the ACTUAL MXU weights so the post-matmul LN correction is
    # consistent with the accumulated products.
    colsum = jnp.sum(w_cd.astype(jnp.float32), axis=0)               # (2Cp,)
    w_e = w_cd[:two_c]                        # multiplies xe = [x0 | x2]
    w_o = w_cd[two_c:]                        # multiplies xo = [x1 | x3]
    cb = jnp.stack([colsum, bias.astype(jnp.float32)], axis=0)       # (2, 2Cp)

    # -- generation-aware VMEM configuration ---------------------------------
    vmem_cap = _vmem_capacity_bytes()
    if vmem_limit_bytes is None:
        if vmem_cap >= 100 * 1024 * 1024:     # 128 MiB parts (v5e / v6e)
            vmem_limit_bytes = 64 * 1024 * 1024
        else:                                 # 64 MiB parts (v7x): keep headroom
            vmem_limit_bytes = 36 * 1024 * 1024
    vmem_budget = (3 * vmem_limit_bytes) // 4

    x_bytes = jnp.dtype(x.dtype).itemsize
    w_bytes = jnp.dtype(compute_dtype).itemsize
    if row_block is not None:
        th = max(1, min(int(row_block), HB))
    else:
        th = _pick_row_tile(HB, Wh, two_c, two_cp, x_bytes, w_bytes,
                            target_rows, vmem_budget, min_steps)
    grid = (pl.cdiv(HB, th),)

    const_buf = pl.Buffered(1)   # constant index_map -> single-buffer the weights
    out3d = pl.pallas_call(
        _patch_merge_kernel,
        out_shape=jax.ShapeDtypeStruct((HB, Wh, two_cp), x.dtype),
        grid=grid,
        in_specs=[
            # h-even / h-odd halves of the same array (parity dim squeezed):
            pl.BlockSpec((th, None, Wh, two_c), lambda i: (i, 0, 0, 0)),
            pl.BlockSpec((th, None, Wh, two_c), lambda i: (i, 1, 0, 0)),
            pl.BlockSpec((two_c, two_cp), lambda i: (0, 0),
                         pipeline_mode=const_buf),
            pl.BlockSpec((two_c, two_cp), lambda i: (0, 0),
                         pipeline_mode=const_buf),
            pl.BlockSpec((2, two_cp), lambda i: (0, 0),
                         pipeline_mode=const_buf),
        ],
        out_specs=pl.BlockSpec((th, Wh, two_cp), lambda i: (i, 0, 0)),
        compiler_params=pltpu.CompilerParams(
            dimension_semantics=("parallel",),
            vmem_limit_bytes=vmem_limit_bytes,
        ),
    )(x_r, x_r, w_e, w_o, cb)

    out = out3d
    if two_cp != two_c:
        # TODO(synk): let downstream consume the padded layout to avoid this
        # extra HBM pass over the output.
        out = out[:, :, :two_c]
    return out.reshape(B, Hh * Wh, two_c)


def patch_merge_ref(x, resolution, gamma, beta, w_red):
    """Pure-JAX reference with the ORIGINAL (torch) math for correctness checks."""
    H, W = resolution
    B, L, C = x.shape
    xg = x.reshape(B, H, W, C)
    x0 = xg[:, 0::2, 0::2, :]
    x1 = xg[:, 1::2, 0::2, :]
    x2 = xg[:, 0::2, 1::2, :]
    x3 = xg[:, 1::2, 1::2, :]
    x4 = jnp.concatenate([x0, x1, x2, x3], axis=-1).reshape(B, -1, 4 * C)
    mean = jnp.mean(x4, axis=-1, keepdims=True)
    var = jnp.mean((x4 - mean) ** 2, axis=-1, keepdims=True)
    y = (x4 - mean) * lax.rsqrt(var + LN_EPS) * gamma + beta
    return jnp.dot(y, w_red, precision=lax.Precision.HIGHEST)


if __name__ == "__main__":
    # Small shapes consistent with the module: B=2, H=W=16, C=4.
    B, H, W, C = 2, 16, 16, 4
    key = jax.random.PRNGKey(0)
    kx, kg, kb, kw = jax.random.split(key, 4)

    x = jax.random.normal(kx, (B, H * W, C), dtype=jnp.float32)
    gamma = 1.0 + 0.1 * jax.random.normal(kg, (4 * C,), dtype=jnp.float32)
    beta = 0.1 * jax.random.normal(kb, (4 * C,), dtype=jnp.float32)
    # torch nn.Linear(4C, 2C).weight is (2C, 4C); we store its transpose (4C, 2C).
    w_red = 0.1 * jax.random.normal(kw, (4 * C, 2 * C), dtype=jnp.float32)

    ref = patch_merge_ref(x, (H, W), gamma, beta, w_red)

    # 1) default config: f32 path, unpadded lanes, multi-step "parallel" grid.
    out = jax.block_until_ready(patch_merge(x, (H, W), gamma, beta, w_red))
    assert out.shape == (B, (H // 2) * (W // 2), 2 * C), out.shape
    err = float(jnp.max(jnp.abs(out - ref)))
    assert err < 1e-4, err

    # 2) cdiv grid with a ragged last block (row_block=3 does not divide B*H/2=16).
    out2 = jax.block_until_ready(
        patch_merge(x, (H, W), gamma, beta, w_red, row_block=3))
    err2 = float(jnp.max(jnp.abs(out2 - ref)))
    assert err2 < 1e-4, err2

    # 3) lane-padded output path (pad to 128 lanes, slice off in the wrapper).
    out3 = jax.block_until_ready(
        patch_merge(x, (H, W), gamma, beta, w_red, pad_output_lanes=True))
    err3 = float(jnp.max(jnp.abs(out3 - ref)))
    assert err3 < 1e-4, err3

    # 4) bf16 input fast path (bf16 MXU operands, f32 stats/accumulation).
    xb = x.astype(jnp.bfloat16)
    refb = patch_merge_ref(xb.astype(jnp.float32), (H, W), gamma, beta, w_red)
    out4 = jax.block_until_ready(patch_merge(xb, (H, W), gamma, beta, w_red))
    err4 = float(jnp.max(jnp.abs(out4.astype(jnp.float32) - refb)))
    assert err4 < 5e-2, err4

    # 5) opt-in bf16 MXU operands for f32 inputs (v5e recommendation).
    out5 = jax.block_until_ready(
        patch_merge(x, (H, W), gamma, beta, w_red, mxu_bf16=True))
    err5 = float(jnp.max(jnp.abs(out5 - ref)))
    assert err5 < 5e-2, err5

    print("KERNEL_OK")
</pallas_src>

<mosaic_0001>
module attributes {stable_mosaic.version = 11 : i64} {
  func.func @_patch_merge_kernel(%arg0: i32, %arg1: memref<4x1x8x8xf32, #tpu.memory_space<vmem>>, %arg2: memref<4x1x8x8xf32, #tpu.memory_space<vmem>>, %arg3: memref<8x8xf32, #tpu.memory_space<vmem>>, %arg4: memref<8x8xf32, #tpu.memory_space<vmem>>, %arg5: memref<2x8xf32, #tpu.memory_space<vmem>>, %arg6: memref<4x8x8xf32, #tpu.memory_space<vmem>>) attributes {dimension_semantics = [#tpu.dimension_semantics<parallel>], iteration_bounds = array<i64: 4>, scalar_prefetch = 0 : i64, scratch_operands = 0 : i64, tpu.core_type = #tpu.core_type<tc>, window_params = [{transform_indices = @transform_0, window_bounds = array<i64: 4, 1, 8, 8>}, {transform_indices = @transform_1, window_bounds = array<i64: 4, 1, 8, 8>}, {pipeline_mode = #tpu.pipeline_mode<synchronous>, transform_indices = @transform_2, window_bounds = array<i64: 8, 8>}, {pipeline_mode = #tpu.pipeline_mode<synchronous>, transform_indices = @transform_3, window_bounds = array<i64: 8, 8>}, {pipeline_mode = #tpu.pipeline_mode<synchronous>, transform_indices = @transform_4, window_bounds = array<i64: 2, 8>}, {transform_indices = @transform_5, window_bounds = array<i64: 4, 8, 8>}]} {
    %c0 = arith.constant 0 : index
    %c0_0 = arith.constant 0 : index
    %c0_1 = arith.constant 0 : index
    %c0_2 = arith.constant 0 : index
    %0 = vector.load %arg1[%c0, %c0_0, %c0_1, %c0_2] : memref<4x1x8x8xf32, #tpu.memory_space<vmem>>, vector<4x1x8x8xf32>
    %1 = vector.shape_cast %0 : vector<4x1x8x8xf32> to vector<4x8x8xf32>
    %2 = vector.shape_cast %1 : vector<4x8x8xf32> to vector<32x8xf32>
    %c0_3 = arith.constant 0 : index
    %c0_4 = arith.constant 0 : index
    %c0_5 = arith.constant 0 : index
    %c0_6 = arith.constant 0 : index
    %3 = vector.load %arg2[%c0_3, %c0_4, %c0_5, %c0_6] : memref<4x1x8x8xf32, #tpu.memory_space<vmem>>, vector<4x1x8x8xf32>
    %4 = vector.shape_cast %3 : vector<4x1x8x8xf32> to vector<4x8x8xf32>
    %5 = vector.shape_cast %4 : vector<4x8x8xf32> to vector<32x8xf32>
    %cst = arith.constant dense<0.000000e+00> : vector<32xf32>
    %6 = vector.multi_reduction <add>, %2, %cst [1] : vector<32x8xf32> to vector<32xf32>
    %7 = vector.shape_cast %6 : vector<32xf32> to vector<32x1xf32>
    %cst_7 = arith.constant dense<0.000000e+00> : vector<32xf32>
    %8 = vector.multi_reduction <add>, %5, %cst_7 [1] : vector<32x8xf32> to vector<32xf32>
    %9 = vector.shape_cast %8 : vector<32xf32> to vector<32x1xf32>
    %10 = arith.addf %7, %9 : vector<32x1xf32>
    %11 = arith.mulf %2, %2 : vector<32x8xf32>
    %cst_8 = arith.constant dense<0.000000e+00> : vector<32xf32>
    %12 = vector.multi_reduction <add>, %11, %cst_8 [1] : vector<32x8xf32> to vector<32xf32>
    %13 = vector.shape_cast %12 : vector<32xf32> to vector<32x1xf32>
    %14 = arith.mulf %5, %5 : vector<32x8xf32>
    %cst_9 = arith.constant dense<0.000000e+00> : vector<32xf32>
    %15 = vector.multi_reduction <add>, %14, %cst_9 [1] : vector<32x8xf32> to vector<32xf32>
    %16 = vector.shape_cast %15 : vector<32xf32> to vector<32x1xf32>
    %17 = arith.addf %13, %16 : vector<32x1xf32>
    %cst_10 = arith.constant 6.250000e-02 : f32
    %18 = vector.broadcast %cst_10 : f32 to vector<32x1xf32>
    %19 = arith.mulf %10, %18 : vector<32x1xf32>
    %cst_11 = arith.constant 6.250000e-02 : f32
    %20 = vector.broadcast %cst_11 : f32 to vector<32x1xf32>
    %21 = arith.mulf %17, %20 : vector<32x1xf32>
    %22 = arith.mulf %19, %19 : vector<32x1xf32>
    %23 = arith.subf %21, %22 : vector<32x1xf32>
    %cst_12 = arith.constant 0.000000e+00 : f32
    %24 = vector.broadcast %cst_12 : f32 to vector<32x1xf32>
    %25 = arith.maximumf %23, %24 : vector<32x1xf32>
    %cst_13 = arith.constant 9.99999974E-6 : f32
    %26 = vector.broadcast %cst_13 : f32 to vector<32x1xf32>
    %27 = arith.addf %25, %26 : vector<32x1xf32>
    %28 = math.rsqrt %27 : vector<32x1xf32>
    %c0_14 = arith.constant 0 : index
    %c0_15 = arith.constant 0 : index
    %29 = vector.load %arg3[%c0_14, %c0_15] : memref<8x8xf32, #tpu.memory_space<vmem>>, vector<8x8xf32>
    %cst_16 = arith.constant dense<0.000000e+00> : vector<32x8xf32>
    %30 = tpu.matmul %2, %29, %cst_16 {dimension_numbers = #tpu.dot_dimension_numbers<[1], [0], [0], [1], [0, 0, 1, 1], [], []>} : vector<32x8xf32>, vector<8x8xf32>, vector<32x8xf32> -> vector<32x8xf32>
    %c0_17 = arith.constant 0 : index
    %c0_18 = arith.constant 0 : index
    %31 = vector.load %arg4[%c0_17, %c0_18] : memref<8x8xf32, #tpu.memory_space<vmem>>, vector<8x8xf32>
    %cst_19 = arith.constant dense<0.000000e+00> : vector<32x8xf32>
    %32 = tpu.matmul %5, %31, %cst_19 {dimension_numbers = #tpu.dot_dimension_numbers<[1], [0], [0], [1], [0, 0, 1, 1], [], []>} : vector<32x8xf32>, vector<8x8xf32>, vector<32x8xf32> -> vector<32x8xf32>
    %33 = arith.addf %30, %32 : vector<32x8xf32>
    %c0_20 = arith.constant 0 : index
    %c0_21 = arith.constant 0 : index
    %34 = vector.load %arg5[%c0_20, %c0_21] : memref<2x8xf32, #tpu.memory_space<vmem>>, vector<1x8xf32>
    %c1 = arith.constant 1 : index
    %c0_22 = arith.constant 0 : index
    %35 = vector.load %arg5[%c1, %c0_22] : memref<2x8xf32, #tpu.memory_space<vmem>>, vector<1x8xf32>
    %36 = vector.broadcast %19 : vector<32x1xf32> to vector<32x8xf32>
    %37 = vector.broadcast %34 : vector<1x8xf32> to vector<32x8xf32>
    %38 = arith.mulf %36, %37 : vector<32x8xf32>
    %39 = arith.subf %33, %38 : vector<32x8xf32>
    %40 = vector.broadcast %28 : vector<32x1xf32> to vector<32x8xf32>
    %41 = arith.mulf %40, %39 : vector<32x8xf32>
    %42 = vector.broadcast %35 : vector<1x8xf32> to vector<32x8xf32>
    %43 = arith.addf %41, %42 : vector<32x8xf32>
    %44 = vector.shape_cast %43 : vector<32x8xf32> to vector<4x8x8xf32>
    %c0_23 = arith.constant 0 : index
    %c0_24 = arith.constant 0 : index
    %c0_25 = arith.constant 0 : index
    %45 = vector.load %arg6[%c0_23, %c0_24, %c0_25] : memref<4x8x8xf32, #tpu.memory_space<vmem>>, vector<4x8x8xf32>
    tpu.vector_store %arg6[%c0_23, %c0_24, %c0_25], %44 {strides = array<i32>} : memref<4x8x8xf32, #tpu.memory_space<vmem>>, vector<4x8x8xf32>,
    return
  }
  func.func @transform_0(%arg0: i32) -> (i32, i32, i32, i32) {
    %c0_i32 = arith.constant 0 : i32
    %c0_i32_0 = arith.constant 0 : i32
    %c0_i32_1 = arith.constant 0 : i32
    %c0_i32_2 = arith.constant 0 : i32
    return %arg0, %c0_i32, %c0_i32_0, %c0_i32_1 : i32, i32, i32, i32
  }
  func.func @transform_1(%arg0: i32) -> (i32, i32, i32, i32) {
    %c1_i32 = arith.constant 1 : i32
    %c0_i32 = arith.constant 0 : i32
    %c0_i32_0 = arith.constant 0 : i32
    %c0_i32_1 = arith.constant 0 : i32
    return %arg0, %c1_i32, %c0_i32, %c0_i32_0 : i32, i32, i32, i32
  }
  func.func @transform_2(%arg0: i32) -> (i32, i32) {
    %c0_i32 = arith.constant 0 : i32
    %c0_i32_0 = arith.constant 0 : i32
    %c0_i32_1 = arith.constant 0 : i32
    return %c0_i32, %c0_i32_0 : i32, i32
  }
  func.func @transform_3(%arg0: i32) -> (i32, i32) {
    %c0_i32 = arith.constant 0 : i32
    %c0_i32_0 = arith.constant 0 : i32
    %c0_i32_1 = arith.constant 0 : i32
    return %c0_i32, %c0_i32_0 : i32, i32
  }
  func.func @transform_4(%arg0: i32) -> (i32, i32) {
    %c0_i32 = arith.constant 0 : i32
    %c0_i32_0 = arith.constant 0 : i32
    %c0_i32_1 = arith.constant 0 : i32
    return %c0_i32, %c0_i32_0 : i32, i32
  }
  func.func @transform_5(%arg0: i32) -> (i32, i32, i32) {
    %c0_i32 = arith.constant 0 : i32
    %c0_i32_0 = arith.constant 0 : i32
    %c0_i32_1 = arith.constant 0 : i32
    return %arg0, %c0_i32, %c0_i32_0 : i32, i32, i32
  }
}

</mosaic_0001>

<bundles_post_ra>
// kernel: tpu_custom_call.1
= control target key start
LH: loop header
LB: loop body
LE: loop exit
PB: predicated region body
PF: predicated region fallthrough
CT: control target
= control target key end

     0   :  { %s1565_s0 = inlined_call_operand.hbm [shape: f32[16,2,8,8], index: 0, kind: input, shape index: {}]   ;;  %s1566_s1 = inlined_call_operand.hbm [shape: f32[16,2,8,8], index: 1, kind: input, shape index: {}]   ;;  %s1567_s2 = inlined_call_operand.hbm [shape: f32[8,8], index: 2, kind: input, shape index: {}]   ;;  %s1568_s3 = inlined_call_operand.hbm [shape: f32[8,8], index: 3, kind: input, shape index: {}]   ;;  %s1569_s4 = inlined_call_operand.hbm [shape: f32[2,8], index: 4, kind: input, shape index: {}]   ;;  %s1570_s5 = inlined_call_operand.hbm [shape: f32[16,8,8], index: 5, kind: output, shape index: {}]  }
   0x1   :  { %1576 = sst [smem:[#allocation17_spill]] %s1565_s0 }
   0x2   :  { %1577 = sst [smem:[#allocation18_spill]] %s1567_s2 }
   0x3   :  { %1578 = sst [smem:[#allocation19_spill]] %s1568_s3 }
   0x4   :  { %1579 = sst [smem:[#allocation20_spill]] %s1569_s4 }
   0x5   :  { %10 = vsyncpa [#allocation3], 0 }
   0x6   :  { %12 = vsyncpa [#allocation3 + $0x1], 0 }
   0x7   :  { %13 = vsyncpa [#allocation6], 0 }
   0x8   :  { %15 = vsyncpa [#allocation6 + $0x1], 0 }
   0x9   :  { %16 = vsyncpa [#allocation9], 0 }
   0xa   :  { %17 = vsyncpa [#allocation4], 0 }
   0xb   :  { %19 = vsyncpa [#allocation4 + $0x1], 0  ;;  %s1223_s18 = smov 0   ;;  %s1225_s19 = smov 0  }
   0xc   :  { %s1227_s20 = smov 0   ;;  %s1229_s21 = smov 0  }
   0xd LB: > { %s1244_s22 = sadd.s32 4294967295, %s1180_s21   ;;  %s793_s23 = sadd.s32 4294967294, %s1180_s21   ;;  %s1180_s21 = sphi %s1229_s21, %s1604_s21   ;;  %s1176_s20 = sphi %s1227_s20, %s1603_s20   ;;  %s1172_s19 = sphi %s1225_s19, %s1602_s19   ;;  %s1168_s18 = sphi %s1223_s18, %s1601_s18  }
   0xe   : > { %s1248_s24 = sadd.s32 1, %s1180_s21   ;;  %s32_s25 = sadd.s32 1, %s1176_s20 }
   0xf   : > { %s29_s26 = ssub.s32 %s1180_s21, %s1248_s24  ;;  %p39_p0 = scmp.ne.s32.totalorder %s1176_s20, %s1172_s19 }
  0x10   : > { %p30_p1 = scmp.eq.s32.totalorder %s29_s26, 0  ;;  %p40_p2 = scmp.eq.s32.totalorder %s1180_s21, 0 }
  0x11   : > { %p45_p3 = scmp.ne.s32.totalorder %s1172_s19, %s1168_s18  ;;  %p1571_p4 = scmp.eq.s32.totalorder %s1244_s22, 0 }
  0x12   : > { %s1260_s27 = scalar_select %p30_p1, %s1176_s20, %s32_s25  }
  0x13   : > { %p1262_p5 = por %p40_p2, %p39_p0  ;;  %p1268_p6 = por %p1571_p4, %p45_p3 }
  0x14   : > { %p158_p7 = scmp.eq.s32.totalorder %s1244_s22, 3  ;;  %p164_p8 = scmp.eq.s32.totalorder %s793_s23, 3 }
  0x15   : > { %s1581_s29 = scalar_select %p1268_p6, 1, 0 }
  0x16   : > { %p794_p9 = scmp.ge.s32.totalorder %s1180_s21, 1  ;;  %p171_p10 = scmp.lt.s32.totalorder %s1180_s21, 5 }
  0x17   : > { %p1275_p11 = por %p158_p7, %p39_p0  ;;  %p1279_p12 = por %p164_p8, %p45_p3 }
  0x18   : > { %p1283_p13 = pnand %p794_p9, %p171_p10  ;;  %s1182_s8 = smov [#allocation7]  }
  0x19   : > { %s1582_s30 = scalar_select %p1275_p11, 1, 0 }
  0x1a   : > { %s1583_s6 = scalar_select %p1279_p12, 1, 0 }
  0x1b   : > { %s1584_s7 = scalar_select %p1283_p13, 1, 0 }
  0x1c   : > { %p880_p1 = pneg %p1283_p13  ;;  %s184_s9 = sshll.u32 %s1182_s8, 4  ;;  %s185_s9 = int_to_ptr.vmem [resolvable:$true] %s184_s9 }
  0x1d   : > { %p904_p2 = scmp.lt.s32.totalorder %s1180_s21, 4  ;;  %s1183_s12 = smov [#allocation8]  }
  0x1e   : > { %p1292_p0 = pnand %p880_p1, %p1571_p4  ;;  %s195_s13 = sshll.u32 %s1183_s12, 4  ;;  %s1302_s13 = int_to_ptr.vmem [resolvable:$true] %s195_s13 }
  0x1f   : > { %p1298_p3 = pnand %p904_p2, %p1262_p5  ;;  %s1587_s2 = sld [smem:[#allocation18_spill]] }
  0x20   : > { %p1312_p8 = pneg %p1292_p0 }
  0x21   : > { %s1586_s11 = scalar_select %p1298_p3, 1, 0 }
  0x25   : > { %s957_s16 = scalar_lea.hbm %s1587_s2, 128 }
  0x26   : > { %p958_p7 = scmp.ne.s32.totalorder %s1587_s2, %s957_s16  ;;  %p964_p10 = scmp.lt.u32.totalorder %s957_s16, %s1587_s2 }
  0x28   : > { %p960_p5 = pnand %p1312_p8, %p958_p7 }
  0x2a   : > { %p961_p9 = pneg %p960_p5 }
  0x2c   : > { %p966_p1 = pnand %p964_p10, %p961_p9 }
  0x2e   : > { %969 = shalt.err (!%p966_p1)
}
  0x2f   : > { %s970_s8 = scalar_lea.vmem %s185_s9, 128  ;;  %p978_p11 = scmp.lt.s32.totalorder %s185_s9, %s185_s9 }
  0x30   : > { %p971_p2 = scmp.ne.s32.totalorder %s185_s9, %s970_s8  ;;  %p979_p6 = scmp.lt.s32.totalorder %s970_s8, %s970_s8 }
  0x32   : > { %p973_p4 = pnand %p971_p2, %p1312_p8  ;;  %p980_p13 = por %p979_p6, %p978_p11 }
  0x34   : > { %p974_p12 = pneg %p973_p4 }
  0x36   : > { %p981_p3 = pnand %p980_p13, %p974_p12 }
  0x38   : > { %984 = shalt.err (!%p981_p3)
}
  0x39   : > { %883 = dma.hbm_to_vmem [thread:$0]  (!%p1292_p0), %s1587_s2, 128, %s185_s9, [#allocation6]  }
  0x3a   : > { %s1589_s3 = sld [smem:[#allocation19_spill]] }
  0x40   : > { %s985_s17 = scalar_lea.hbm %s1589_s3, 128 }
  0x41   : > { %p986_p4 = scmp.ne.s32.totalorder %s1589_s3, %s985_s17  ;;  %p992_p11 = scmp.lt.u32.totalorder %s985_s17, %s1589_s3 }
  0x43   : > { %p988_p7 = pnand %p986_p4, %p1312_p8 }
  0x45   : > { %p989_p6 = pneg %p988_p7 }
  0x47   : > { %p994_p12 = pnand %p992_p11, %p989_p6 }
  0x49   : > { %997 = shalt.err (!%p994_p12)
}
  0x4a   : > { %s998_s9 = scalar_lea.vmem %s1302_s13, 128  ;;  %p1006_p9 = scmp.lt.s32.totalorder %s1302_s13, %s1302_s13 }
  0x4b   : > { %p999_p13 = scmp.ne.s32.totalorder %s1302_s13, %s998_s9  ;;  %p1007_p10 = scmp.lt.s32.totalorder %s998_s9, %s998_s9 }
  0x4d   : > { %p1001_p3 = pnand %p999_p13, %p1312_p8  ;;  %p1008_p1 = por %p1007_p10, %p1006_p9 }
  0x4f   : > { %p1002_p5 = pneg %p1001_p3 }
  0x51   : > { %p1009_p2 = pnand %p1008_p1, %p1002_p5 }
  0x53   : > { %1012 = shalt.err (!%p1009_p2)
}
  0x54   : > { %886 = dma.hbm_to_vmem [thread:$0]  (!%p1292_p0), %s1589_s3, 128, %s1302_s13, [#allocation9]  }
  0x55   : > { %s1184_s15 = smov [#allocation10]   ;;  %s217_s17 = sand.u32 1, %s1176_s20  }
  0x56   : > { %s206_s16 = sshll.u32 %s1184_s15, 4  ;;  %s1590_s4 = sld [smem:[#allocation20_spill]]  ;;  %s207_s16 = int_to_ptr.vmem [resolvable:$true] %s206_s16 }
  0x5c   : > { %s1013_s28 = scalar_lea.hbm %s1590_s4, 32 }
  0x5d   : > { %p1014_p4 = scmp.ne.s32.totalorder %s1590_s4, %s1013_s28  ;;  %p1020_p11 = scmp.lt.u32.totalorder %s1013_s28, %s1590_s4 }
  0x5f   : > { %p1016_p7 = pnand %p1014_p4, %p1312_p8 }
  0x61   : > { %p1017_p6 = pneg %p1016_p7 }
  0x63   : > { %p1022_p12 = pnand %p1020_p11, %p1017_p6 }
  0x65   : > { %1025 = shalt.err (!%p1022_p12)
}
  0x66   : > { %s1026_s13 = scalar_lea.vmem %s207_s16, 32  ;;  %p1034_p9 = scmp.lt.s32.totalorder %s207_s16, %s207_s16 }
  0x67   : > { %p1027_p13 = scmp.ne.s32.totalorder %s207_s16, %s1026_s13  ;;  %p1035_p10 = scmp.lt.s32.totalorder %s1026_s13, %s1026_s13 }
  0x69   : > { %p1029_p3 = pnand %p1027_p13, %p1312_p8  ;;  %p1036_p1 = por %p1035_p10, %p1034_p9 }
  0x6b   : > { %p1030_p5 = pneg %p1029_p3 }
  0x6d   : > { %p1037_p2 = pnand %p1036_p1, %p1030_p5 }
  0x6f   : > { %1040 = shalt.err (!%p1037_p2)
}
  0x70   : > { %889 = dma.hbm_to_vmem [thread:$0]  (!%p1292_p0), %s1590_s4, 32, %s207_s16, [#allocation9]  }
  0x71   : > { %s1370_s2 = sshll.u32 %s217_s17, 5  ;;  %s829_s25 = sshll.u32 %s1180_s21, 10 }
  0x72   : > { %s1591_s0 = sld [smem:[#allocation17_spill]]  ;;  %s221_s10 = scalar_lea.vmem [#allocation2], %s1370_s2 }
  0x73   : > { %s229_s8 = sshll.u32 %s221_s10, 4  ;;  %s1383_s9 = scalar_lea.sflag [#allocation3], %s217_s17  ;;  %s1381_s8 = int_to_ptr.vmem [resolvable:$true] %s229_s8 }
  0x74   : > { %p1592_p8 = scmp.ne.s32.totalorder %s1586_s11, 0 }
  0x76   : > { %p1043_p4 = pneg %p1592_p8 }
  0x78   : > { %s1378_s28 = scalar_lea.hbm %s1591_s0, %s829_s25  ;;  %s1046_s14 = scalar_lea.hbm %s1591_s0, 4096 }
  0x79   : > { %s1041_s16 = scalar_lea.hbm %s1378_s28, 512  ;;  %p1047_p11 = scmp.lt.u32.totalorder %s1378_s28, %s1591_s0 }
  0x7a   : > { %p1042_p0 = scmp.ne.s32.totalorder %s1378_s28, %s1041_s16  ;;  %p1048_p12 = scmp.lt.u32.totalorder %s1046_s14, %s1041_s16 }
  0x7b   : > { %p1050_p3 = scmp.lt.u32.totalorder %s1041_s16, %s1378_s28 }
  0x7c   : > { %p1044_p7 = pnand %p1043_p4, %p1042_p0  ;;  %p1049_p13 = por %p1048_p12, %p1047_p11 }
  0x7e   : > { %p1045_p6 = pneg %p1044_p7  ;;  %p1051_p5 = por %p1050_p3, %p1049_p13 }
  0x80   : > { %p1052_p9 = pnand %p1051_p5, %p1045_p6 }
  0x82   : > { %1055 = shalt.err (!%p1052_p9)
}
  0x83   : > { %s1056_s17 = scalar_lea.vmem %s1381_s8, 512  ;;  %s1185_s26 = smov [#allocation2]  }
  0x84   : > { %p1057_p10 = scmp.ne.s32.totalorder %s1381_s8, %s1056_s17  ;;  %s1061_s10 = sshll.u32 %s1185_s26, 4  ;;  %s1062_s10 = int_to_ptr.vmem [resolvable:$false] %s1061_s10 }
  0x85   : > { %s1063_s12 = scalar_lea.vmem %s1062_s10, 1024  ;;  %p1064_p0 = scmp.lt.s32.totalorder %s1381_s8, %s1062_s10 }
  0x86   : > { %p1059_p1 = pnand %p1057_p10, %p1043_p4  ;;  %p1065_p7 = scmp.lt.s32.totalorder %s1063_s12, %s1056_s17 }
  0x88   : > { %p1060_p2 = pneg %p1059_p1  ;;  %p1066_p11 = por %p1065_p7, %p1064_p0 }
  0x8a   : > { %p1067_p12 = pnand %p1066_p11, %p1060_p2 }
  0x8c   : > { %1070 = shalt.err (!%p1067_p12)
}
  0x8d   : > { %s1186_s16 = smov 256   ;;  %s1187_s13 = smov 128  }
  0x8e   : > { %s1188_s14 = smov 8   ;;  %s708_s17 = scalar_lea.hbm %s1566_s1, %s829_s25 }
  0x8f   : > { %893 = dma.hbm_to_vmem [thread:$0]  (!%p1592_p8), %s1378_s28, 512, %s1381_s8, %s1383_s9, %s1186_s16, %s1187_s13, %s1188_s14  }
  0x90   : > { %s243_s26 = scalar_lea.vmem [#allocation5], %s1370_s2  ;;  %s1420_s12 = scalar_lea.hbm %s708_s17, 128 }
  0x91   : > { %s252_s10 = sshll.u32 %s243_s26, 4  ;;  %s239_s0 = sand.u32 1, %s1180_s21   ;;  %s1422_s10 = int_to_ptr.vmem [resolvable:$true] %s252_s10 }
  0x92   : > { %s1425_s3 = scalar_lea.sflag [#allocation6], %s239_s0  ;;  %s1101_s4 = scalar_lea.hbm %s708_s17, 640 }
  0x93   : > { %p1072_p6 = scmp.ne.s32.totalorder %s1420_s12, %s1101_s4  ;;  %s1076_s2 = scalar_lea.hbm %s1566_s1, 4096 }
  0x94   : > { %p1077_p5 = scmp.lt.u32.totalorder %s1420_s12, %s1566_s1  ;;  %p1078_p9 = scmp.lt.u32.totalorder %s1076_s2, %s1101_s4 }
  0x95   : > { %p1074_p13 = pnand %p1072_p6, %p1043_p4  ;;  %p1080_p1 = scmp.lt.u32.totalorder %s1101_s4, %s1420_s12 }
  0x96   : > { %p1079_p10 = por %p1078_p9, %p1077_p5 }
  0x97   : > { %p1075_p3 = pneg %p1074_p13 }
  0x98   : > { %p1081_p2 = por %p1080_p1, %p1079_p10 }
  0x9a   : > { %p1082_p0 = pnand %p1081_p2, %p1075_p3 }
  0x9c   : > { %1085 = shalt.err (!%p1082_p0)
}
  0x9d   : > { %s1086_s0 = scalar_lea.vmem %s1422_s10, 512  ;;  %s1189_s15 = smov [#allocation5]  }
  0x9e   : > { %p1087_p7 = scmp.ne.s32.totalorder %s1422_s10, %s1086_s0  ;;  %s1091_s23 = sshll.u32 %s1189_s15, 4  ;;  %s1092_s23 = int_to_ptr.vmem [resolvable:$false] %s1091_s23 }
  0x9f   : > { %s1093_s17 = scalar_lea.vmem %s1092_s23, 1024  ;;  %p1094_p6 = scmp.lt.s32.totalorder %s1422_s10, %s1092_s23 }
  0xa0   : > { %p1089_p11 = pnand %p1087_p7, %p1043_p4  ;;  %p1095_p13 = scmp.lt.s32.totalorder %s1093_s17, %s1086_s0 }
  0xa2   : > { %p1090_p12 = pneg %p1089_p11  ;;  %p1096_p5 = por %p1095_p13, %p1094_p6 }
  0xa4   : > { %p1097_p9 = pnand %p1096_p5, %p1090_p12 }
  0xa6   : > { %1100 = shalt.err (!%p1097_p9)
}
  0xa7   : > { %896 = dma.hbm_to_vmem [thread:$0]  (!%p1592_p8), %s1420_s12, 512, %s1422_s10, %s1425_s3, %s1186_s16, %s1187_s13, %s1188_s14  }
  0xa8   : > { %p1593_p4 = scmp.ne.s32.totalorder %s1584_s7, 0 }
  0xa9   : > { %s1456_s4 = sand.u32 (!%p1593_p4), 1, %s1172_s19   ;;  %p1594_p3 = scmp.ne.s32.totalorder (!%p1593_p4), %s1581_s29, 0 }
  0xaa   : > { %264 = sbr.rel (%p1593_p4) target bundleno = 431 (0x1af), region = 40  ;;  %s1459_s26 = sshll.u32 (!%p1593_p4), %s1456_s4, 5 }
  0xab   : > { %s267_s11 = scalar_lea.sflag (!%p1593_p4), [#allocation3], %s1456_s4  ;;  %s1463_s28 = scalar_lea.vmem (!%p1593_p4), [#allocation2], %s1459_s26 }
  0xb1   : > { %1147 = dma.done.wait (%p1594_p3), %s267_s11, 512  }
  0xb2   : > { %1149 = vsyncadd (%p1594_p3), %s267_s11, 4294966784  ;;  %s275_s3 = sand.u32 1, %s1244_s22   ;;  %s279_s16 = scalar_lea.vmem [#allocation5], %s1459_s26 }
  0xb3   : > { %s276_s7 = scalar_lea.sflag [#allocation6], %s275_s3 }
  0xb4   : > { %1151 = dma.done.wait (%p1594_p3), %s276_s7, 512  }
  0xb5   : > { %1153 = vsyncadd (%p1594_p3), %s276_s7, 4294966784  ;;  %p1595_p8 = scmp.eq.s32.totalorder %s1244_s22, 0 }
  0xb7   : > { %1155 = dma.done.wait (%p1595_p8), [#allocation6], 128   ;;  %p1596_p10 = pmov %p1595_p8 }
  0xb8   : > { %p1597_p1 = pmov %p1595_p8 }
  0xb9   : > { %1157 = vsyncadd (%p1596_p10), [#allocation6], 4294967168 }
  0xba   : > { %1159 = dma.done.wait (%p1597_p1), [#allocation9], 160   ;;  %p1598_p2 = pmov %p1597_p1 }
  0xbb   : > { %vm334_vm0 = vcmask 64512   ;;  %v428_v0 = vld [vmem:[#allocation8] sm:$0xff]  ;;  %v427_v1 = vld [vmem:[#allocation7] sm:$0xff]  ;;  %v332_v6 = vld [vmem:[%s279_s16 + $0x10] sm:$0xff]  ;;  %s831_s29 = sshll.u32 %s1244_s22, 9  ;;  %s322_s13 = scalar_lea.vmem [#allocation11], %s1459_s26 }
  0xbc   : > { %1161 = vsyncadd (%p1598_p2), [#allocation9], 4294967136  ;;  %v330_v2 = vld [vmem:[%s279_s16] sm:$0xff]  ;;  %842 = vmatprep.subr.mxu1 %v428_v0  ;;  %850 = vmatprep.subr.mxu0 %v427_v1  ;;  %v331_v4 = vld [vmem:[%s279_s16 + $0x8] sm:$0xff]  ;;  %v353_v16 = vsel %vm334_vm0, %v332_v6, 0.0  ;;  %v381_v30 = vmul.f32 %v332_v6, %v332_v6  ;;  %s667_s14 = sshll.u32 %s322_s13, 4  ;;  %s1518_s25 = scalar_lea.hbm %s1570_s5, %s831_s29  ;;  %s1520_s14 = int_to_ptr.vmem [resolvable:$true] %s667_s14 }
  0xbd   : > { %v326_v3 = vld [vmem:[%s1463_s28] sm:$0xff]  ;;  %v327_v5 = vld [vmem:[%s1463_s28 + $0x8] sm:$0xff]  ;;  %843 = vmatpush3.msra.mxu1 %v428_v0  ;;  %844 = vmatprep.mubr.msk.f32.mxu1 %vm334_vm0, %v330_v2  ;;  %v328_v7 = vld [vmem:[%s1463_s28 + $0x10] sm:$0xff]  ;;  %v347_v14 = vsel %vm334_vm0, %v330_v2, 0.0  ;;  %v350_v15 = vsel %vm334_vm0, %v331_v4, 0.0  ;;  %v379_v26 = vmul.f32 %v330_v2, %v330_v2  ;;  %v380_v27 = vmul.f32 %v331_v4, %v331_v4  ;;  %s654_s22 = scalar_lea.sflag [#allocation4], %s1456_s4 }
  0xbe   : > { %851 = vmatpush3.msra.mxu0 %v427_v1  ;;  %852 = vmatprep.mubr.msk.f32.mxu0 %vm334_vm0, %v326_v3  ;;  %v335_v8 = vsel %vm334_vm0, %v326_v3, 0.0  ;;  %v341_v9 = vsel %vm334_vm0, %v328_v7, 0.0  ;;  %v333_v10 = vld [vmem:[%s279_s16 + $0x18] sm:$0xff]  ;;  %v338_v12 = vsel %vm334_vm0, %v327_v5, 0.0  ;;  %v363_v18 = vmul.f32 %v326_v3, %v326_v3  ;;  %s1102_s2 = scalar_lea.vmem %s1520_s14, 512  ;;  %p1599_p7 = scmp.ne.s32.totalorder %s1582_s30, 0 }
  0xbf   : > { %845 = vmatmul.mubr.msk.f32.vlgmr.msra.gmra.mrb[0].mxu1 %vm334_vm0, %v331_v4  ;;  %853 = vmatmul.mubr.msk.f32.vlgmr.msra.gmra.mrb[0].mxu0 %vm334_vm0, %v327_v5  ;;  %v329_v11 = vld [vmem:[%s1463_s28 + $0x18] sm:$0xff]  ;;  %v356_v17 = vsel %vm334_vm0, %v333_v10, 0.0  ;;  %v364_v19 = vmul.f32 %v327_v5, %v327_v5  ;;  %v365_v22 = vmul.f32 %v328_v7, %v328_v7  ;;  %v383_v28 = vsel %vm334_vm0, %v379_v26, 0.0  ;;  %p1103_p0 = scmp.ne.s32.totalorder %s1520_s14, %s1102_s2  ;;  %s1190_s8 = smov [#allocation11]  }
  0xc0   : > { %847 = vmatprep.mubr.msk.f32.mxu1 %vm334_vm0, %v332_v6  ;;  %855 = vmatprep.mubr.msk.f32.mxu0 %vm334_vm0, %v328_v7  ;;  %v344_v13 = vsel %vm334_vm0, %v329_v11, 0.0  ;;  %v367_v20 = vsel %vm334_vm0, %v363_v18, 0.0  ;;  %v366_v23 = vmul.f32 %v329_v11, %v329_v11  ;;  %v386_v29 = vsel %vm334_vm0, %v380_v27, 0.0  ;;  %v821_v18 = vld [vmem:[#allocation10] ss:$0 sm:$0xff]  ;;  %s1106_s9 = sshll.u32 %s1190_s8, 4  ;;  %s1107_s9 = int_to_ptr.vmem [resolvable:$false] %s1106_s9 }
  0xc1   : > { %336 = vadd.xlane.f32.xlu0 %v335_v8  ;;  %342 = vadd.xlane.f32.xlu1 %v341_v9  ;;  %v370_v21 = vsel %vm334_vm0, %v364_v19, 0.0  ;;  %v373_v24 = vsel %vm334_vm0, %v365_v22, 0.0  ;;  %v382_v31 = vmul.f32 %v333_v10, %v333_v10  ;;  %v389_v32 = vsel %vm334_vm0, %v381_v30, 0.0  ;;  %p1104_p11 = pnand %p1103_p0, %p1599_p7  ;;  %s1108_s0 = scalar_lea.vmem %s1107_s9, 1024 }
  0xc2   : > { %v376_v25 = vsel %vm334_vm0, %v366_v23, 0.0  ;;  %p1109_p6 = scmp.lt.s32.totalorder %s1520_s14, %s1107_s9  ;;  %p1110_p13 = scmp.lt.s32.totalorder %s1108_s0, %s1102_s2 }
  0xc3   : > { %848 = vmatmul.mubr.msk.f32.gmra.mrb[2].mxu1 %vm334_vm0, %v333_v10  ;;  %856 = vmatmul.mubr.msk.f32.gmra.mrb[2].mxu0 %vm334_vm0, %v329_v11  ;;  %v392_v33 = vsel %vm334_vm0, %v382_v31, 0.0  ;;  %p1105_p12 = pneg %p1104_p11 }
  0xc4   : > { %p1111_p5 = por %p1110_p13, %p1109_p6 }
  0xc5   : > { %339 = vadd.xlane.f32.xlu0 %v338_v12  ;;  %345 = vadd.xlane.f32.xlu1 %v344_v13 }
  0xc6   : > { %p1112_p9 = pnand %p1111_p5, %p1105_p12 }
  0xc9   : > { %348 = vadd.xlane.f32.xlu0 %v347_v14  ;;  %351 = vadd.xlane.f32.xlu1 %v350_v15 }
  0xcd   : > { %354 = vadd.xlane.f32.xlu0 %v353_v16  ;;  %357 = vadd.xlane.f32.xlu1 %v356_v17 }
  0xd1   : > { %368 = vadd.xlane.f32.xlu0 %v367_v20  ;;  %371 = vadd.xlane.f32.xlu1 %v370_v21 }
  0xd5   : > { %374 = vadd.xlane.f32.xlu0 %v373_v24  ;;  %377 = vadd.xlane.f32.xlu1 %v376_v25 }
  0xd9   : > { %384 = vadd.xlane.f32.xlu0 %v383_v28  ;;  %387 = vadd.xlane.f32.xlu1 %v386_v29  ;;  %v822_v29 = vld [vmem:[#allocation10 + $0x1] ss:$0 sm:$0xff] }
  0xdd   : > { %390 = vadd.xlane.f32.xlu0 %v389_v32  ;;  %393 = vadd.xlane.f32.xlu1 %v392_v33 }
 0x14e   : > { %v343_v34 = vpop.xlane.xlu1 %342  ;;  %v337_v35 = vpop.xlane.xlu0 %336 }
 0x152   : > { %v346_v36 = vpop.xlane.xlu1 %345  ;;  %v340_v37 = vpop.xlane.xlu0 %339 }
 0x156   : > { %v352_v38 = vpop.xlane.xlu1 %351  ;;  %v349_v39 = vpop.xlane.xlu0 %348 }
 0x157   : > { %v360_v47 = vadd.f32 %v352_v38, %v340_v37  ;;  %v359_v49 = vadd.f32 %v349_v39, %v337_v35 }
 0x159   : > { %v400_v50 = vmul.f32 0.0625, %v360_v47  ;;  %v399_v53 = vmul.f32 0.0625, %v359_v49 }
 0x15a   : > { %v358_v40 = vpop.xlane.xlu1 %357  ;;  %v355_v41 = vpop.xlane.xlu0 %354 }
 0x15b   : > { %v362_v51 = vadd.f32 %v358_v40, %v346_v36  ;;  %v361_v54 = vadd.f32 %v355_v41, %v343_v34  ;;  %v408_v58 = vmul.f32 %v400_v50, %v400_v50  ;;  %v407_v62 = vmul.f32 %v399_v53, %v399_v53 }
 0x15c   : > { %v630_v21 = vmul.f32 %v821_v18, %v400_v50  ;;  %v629_v25 = vmul.f32 %v821_v18, %v399_v53 }
 0x15d   : > { %v402_v59 = vmul.f32 0.0625, %v362_v51  ;;  %v401_v63 = vmul.f32 0.0625, %v361_v54 }
 0x15e   : > { %v372_v42 = vpop.xlane.xlu1 %371  ;;  %v369_v43 = vpop.xlane.xlu0 %368 }
 0x15f   : > { %v410_v2 = vmul.f32 %v402_v59, %v402_v59  ;;  %v409_v5 = vmul.f32 %v401_v63, %v401_v63  ;;  %v632_v34 = vmul.f32 %v821_v18, %v402_v59  ;;  %v631_v39 = vmul.f32 %v821_v18, %v401_v63 }
 0x162   : > { %v378_v44 = vpop.xlane.xlu1 %377  ;;  %v375_v45 = vpop.xlane.xlu0 %374 }
 0x166   : > { %v388_v46 = vpop.xlane.xlu1 %387  ;;  %v385_v48 = vpop.xlane.xlu0 %384 }
 0x167   : > { %v396_v52 = vadd.f32 %v388_v46, %v372_v42  ;;  %v395_v55 = vadd.f32 %v385_v48, %v369_v43 }
 0x169   : > { %v404_v60 = vmul.f32 0.0625, %v396_v52  ;;  %v403_v0 = vmul.f32 0.0625, %v395_v55 }
 0x16a   : > { %v394_v56 = vpop.xlane.xlu1 %393  ;;  %v391_v57 = vpop.xlane.xlu0 %390 }
 0x16b   : > { %v398_v61 = vadd.f32 %v394_v56, %v378_v44  ;;  %v397_v1 = vadd.f32 %v391_v57, %v375_v45  ;;  %v412_v3 = vsub.f32 %v404_v60, %v408_v58  ;;  %v411_v6 = vsub.f32 %v403_v0, %v407_v62 }
 0x16d   : > { %v406_v4 = vmul.f32 0.0625, %v398_v61  ;;  %v405_v7 = vmul.f32 0.0625, %v397_v1  ;;  %v416_v8 = vmax.f32 %v412_v3, 0.0  ;;  %v415_v10 = vmax.f32 %v411_v6, 0.0 }
 0x16f   : > { %v414_v9 = vsub.f32 %v406_v4, %v410_v2  ;;  %v413_v11 = vsub.f32 %v405_v7, %v409_v5  ;;  %v420_v12 = vadd.f32 1e-05, %v416_v8  ;;  %v419_v14 = vadd.f32 1e-05, %v415_v10 }
 0x171   : > { %v418_v13 = vmax.f32 %v414_v9, 0.0  ;;  %v417_v15 = vmax.f32 %v413_v11, 0.0  ;;  %949 = vrsqrt.f32 %v420_v12 }
 0x172   : > { %951 = vrsqrt.f32 %v419_v14 }
 0x173   : > { %v422_v16 = vadd.f32 1e-05, %v418_v13  ;;  %v421_v17 = vadd.f32 1e-05, %v417_v15 }
 0x175   : > { %953 = vrsqrt.f32 %v422_v16 }
 0x176   : > { %955 = vrsqrt.f32 %v421_v17 }
 0x17b   : > { %v950_v28 = vpop.eup %949 }
 0x17c   : > { %v952_v33 = vpop.eup %951 }
 0x17f   : > { %v954_v44 = vpop.eup %953 }
 0x180   : > { %v956_v47 = vpop.eup %955 }
 0x192   : > { %v846_v19 = vpop.f32.mrb[0].mxu1  ;;  %v854_v20 = vpop.f32.mrb[0].mxu0 }
 0x193   : > { %v610_v22 = vadd.f32 %v854_v20, %v846_v19  ;;  %v507_v23 = vpop.f32.mrb[1].mxu1  ;;  %v604_v24 = vpop.f32.mrb[1].mxu0 }
 0x194   : > { %v605_v26 = vadd.f32 %v604_v24, %v507_v23 }
 0x195   : > { %v634_v27 = vsub.f32 %v610_v22, %v630_v21 }
 0x196   : > { %v633_v30 = vsub.f32 %v605_v26, %v629_v25  ;;  %v849_v31 = vpop.f32.mrb[2].mxu1  ;;  %v857_v32 = vpop.f32.mrb[2].mxu0 }
 0x197   : > { %v638_v35 = vmul.f32 %v950_v28, %v634_v27  ;;  %v620_v36 = vadd.f32 %v857_v32, %v849_v31  ;;  %v517_v37 = vpop.f32.mrb[3].mxu1  ;;  %v614_v38 = vpop.f32.mrb[3].mxu0 }
 0x198   : > { %v637_v40 = vmul.f32 %v952_v33, %v633_v30  ;;  %v615_v41 = vadd.f32 %v614_v38, %v517_v37 }
 0x199   : > { %v646_v42 = vadd.f32 %v822_v29, %v638_v35  ;;  %v636_v43 = vsub.f32 %v620_v36, %v632_v34 }
 0x19a   : > { %v645_v45 = vadd.f32 %v822_v29, %v637_v40  ;;  %v635_v46 = vsub.f32 %v615_v41, %v631_v39 }
 0x19b   : > { %650 = vst.msk [vmem:[%s322_s13 + $0x8] sm:$0xff] %vm334_vm0, %v646_v42  ;;  %v640_v48 = vmul.f32 %v954_v44, %v636_v43 }
 0x19c   : > { %649 = vst.msk [vmem:[%s322_s13] sm:$0xff] %vm334_vm0, %v645_v45  ;;  %v639_v49 = vmul.f32 %v956_v47, %v635_v46 }
 0x19d   : > { %v648_v50 = vadd.f32 %v822_v29, %v640_v48 }
 0x19e   : > { %v647_v51 = vadd.f32 %v822_v29, %v639_v49 }
 0x19f   : > { %652 = vst.msk [vmem:[%s322_s13 + $0x18] sm:$0xff] %vm334_vm0, %v648_v50 }
 0x1a0   : > { %651 = vst.msk [vmem:[%s322_s13 + $0x10] sm:$0xff] %vm334_vm0, %v647_v51 }
 0x1a1   : > { %1115 = shalt.err (!%p1112_p9)
}
 0x1a2   : > { %s1116_s15 = scalar_lea.hbm %s1518_s25, 512  ;;  %s1120_s26 = scalar_lea.hbm %s1570_s5, 2048 }
 0x1a3   : > { %p1117_p4 = scmp.ne.s32.totalorder %s1518_s25, %s1116_s15  ;;  %p1121_p10 = scmp.lt.u32.totalorder %s1518_s25, %s1570_s5 }
 0x1a4   : > { %p1122_p1 = scmp.lt.u32.totalorder %s1120_s26, %s1116_s15  ;;  %p1124_p0 = scmp.lt.u32.totalorder %s1116_s15, %s1518_s25 }
 0x1a5   : > { %p1118_p3 = pnand %p1117_p4, %p1599_p7 }
 0x1a6   : > { %p1123_p2 = por %p1122_p1, %p1121_p10 }
 0x1a7   : > { %p1119_p8 = pneg %p1118_p3 }
 0x1a8   : > { %p1125_p11 = por %p1124_p0, %p1123_p2 }
 0x1aa   : > { %p1126_p12 = pnand %p1125_p11, %p1119_p8 }
 0x1ac   : > { %1129 = shalt.err (!%p1126_p12)
}
 0x1ad   : > { %s1191_s3 = smov 128   ;;  %s1192_s7 = smov 8  }
 0x1ae   : > { %878 = dma.vmem_to_hbm [thread:$0]  (%p1599_p7), %s1520_s14, 512, %s1518_s25, %s654_s22, %s1191_s3, %s1191_s3, %s1192_s7  }
 0x1af PF: > { %p908_p6 = scmp.ge.s32.totalorder %s1180_s21, 2  ;;  %s682_s16 = sand.u32 1, %s1168_s18  }
 0x1b0   : > { %p1600_p13 = scmp.ne.s32.totalorder %s1583_s6, 0  ;;  %s683_s29 = scalar_lea.sflag [#allocation4], %s682_s16 }
 0x1b2   : > { %p898_p5 = pnand %p908_p6, %p1600_p13 }
 0x1b4   : > { %1163 = dma.done.wait (!%p898_p5), %s683_s29, 512  }
 0x1b5   : > { %1165 = vsyncadd (!%p898_p5), %s683_s29, 4294966784  ;;  %p22_p9 = scmp.ge.s32.totalorder %s1248_s24, 6   ;;  %s1601_s18 = smov %s1172_s19 }
 0x1b6   : > { %s1602_s19 = smov %s1176_s20  ;;  %s1603_s20 = smov %s1260_s27 }
 0x1b7   : > { %s1604_s21 = smov %s1248_s24  ;;  %24 = sbr.rel (!%p22_p9) target bundleno = 13 (0xd), region = 110 }
 0x1be   :  { %688 = vsyncpa [#allocation3], 1 }
 0x1bf   :  { %690 = vsyncpa [#allocation3 + $0x1], 1 }
 0x1c0   :  { %691 = vsyncpa [#allocation6], 1 }
 0x1c1   :  { %693 = vsyncpa [#allocation6 + $0x1], 1 }
 0x1c2   :  { %694 = vsyncpa [#allocation9], 1 }
 0x1c3   :  { %695 = vsyncpa [#allocation4], 1 }
 0x1c4   :  { %697 = vsyncpa [#allocation4 + $0x1], 1 }

</bundles_post_ra>
